<compile_context>
chip_gen: v7x
topology: tpu7x:2x2x1
jax: 0.10.0
libtpu: 0.0.40
codegen_flags: <defaults>
</compile_context>

<pallas_src>
import functools

import jax
import jax.numpy as jnp
import numpy as np
from jax.experimental import pallas as pl
from jax.experimental.pallas import tpu as pltpu


def rnf_kernel(x_ref, w_ref, b_ref, fcw_ref, fcb_ref, out_ref,
               *, filter_width, num_chunks, hidden_dim):
    # x_ref:   (S, E)      embedded sequence for one batch element
    # w_ref:   (E+H, 4H)   packed gate weights [W_ih ; W_hh], gate order (i, f, g, o)
    # b_ref:   (1, 4H)     packed combined bias (b_ih + b_hh)
    # fcw_ref: (H, CP)     final Linear weight, lane-padded to CP (multiple of 128)
    # fcb_ref: (1, CP)     final Linear bias, lane-padded
    # out_ref: (1, CP)     lane-dense padded logits for this batch element
    W = filter_width
    T = num_chunks
    H = hidden_dim

    h = jnp.zeros((T, H), dtype=jnp.float32)
    c = jnp.zeros((T, H), dtype=jnp.float32)

    # Hoist weight / bias loads out of the recurrence (reused every step).
    w_packed = w_ref[...]      # (E+H, 4H)
    bias = b_ref[...]          # (1, 4H)

    # W is a small static trip count -> unrolled Python loop (LLO-visible).
    for w in range(W):
        # LSTM step input for ALL T chunks at once: contiguous static slice of the
        # sequence (chunk t uses token t+w at LSTM time step w).
        x_t = x_ref[pl.ds(w, T), :]                       # (T, E)
        xh = jnp.concatenate([x_t, h], axis=1)            # (T, E+H)
        # Single fused MXU matmul for all 4 gates + one packed bias add.
        z = jnp.dot(xh, w_packed,
                    preferred_element_type=jnp.float32) + bias   # (T, 4H)
        i_g = jax.nn.sigmoid(z[:, 0 * H:1 * H])
        f_g = jax.nn.sigmoid(z[:, 1 * H:2 * H])
        g_g = jnp.tanh(z[:, 2 * H:3 * H])
        o_g = jax.nn.sigmoid(z[:, 3 * H:4 * H])
        c = f_g * c + i_g * g_g
        h = o_g * jnp.tanh(c)

    # F.max_pool1d over the chunk axis (kernel_size = T) == max over T.
    pooled = jnp.max(h, axis=0, keepdims=True)            # (1, H)
    # Lane-dense (1, CP) store; padded lanes carry zeros and are dropped in the wrapper.
    out_ref[...] = (jnp.dot(pooled, fcw_ref[...],
                            preferred_element_type=jnp.float32) + fcb_ref[...])


def rnf_forward_pallas(batch, params, filter_width):
    tokens, _ = batch
    emb = params["embedding"][tokens].astype(jnp.float32)  # (B, S, E) embedding gather (plain-JAX glue)
    B, S, E = emb.shape
    W = filter_width
    T = S - W + 1
    assert T > 1, "demo assumes the non-degenerate RNFFormatter branch"
    H = params["w_hh"].shape[-1]
    C = params["fc_w"].shape[0]
    G = 4 * H

    # Pack the 4 gate weights along the output (lane) axis and stack the input->gate
    # and hidden->gate halves along the contraction axis: one (E+H, 4H) weight.
    wih_packed = jnp.concatenate([params["w_ih"][k].T for k in range(4)], axis=1)  # (E, 4H)
    whh_packed = jnp.concatenate([params["w_hh"][k].T for k in range(4)], axis=1)  # (H, 4H)
    w_packed = jnp.concatenate([wih_packed, whh_packed], axis=0)                   # (E+H, 4H)
    bias_packed = (params["b_ih"] + params["b_hh"]).reshape(1, G)                  # (1, 4H)

    # Pad the FC to a lane-dense output slab (multiple of 128 lanes).
    CP = ((max(C, 1) + 127) // 128) * 128
    fcw_pad = jnp.zeros((H, CP), jnp.float32).at[:, :C].set(params["fc_w"].T)
    fcb_pad = jnp.zeros((1, CP), jnp.float32).at[:, :C].set(params["fc_b"])

    kernel = functools.partial(rnf_kernel, filter_width=W, num_chunks=T, hidden_dim=H)

    out = pl.pallas_call(
        kernel,
        out_shape=jax.ShapeDtypeStruct((B, 1, CP), jnp.float32),
        grid=(B,),
        in_specs=[
            pl.BlockSpec((None, S, E), lambda b: (b, 0, 0)),   # one full sequence / step
            pl.BlockSpec((E + H, G), lambda b: (0, 0)),
            pl.BlockSpec((1, G), lambda b: (0, 0)),
            pl.BlockSpec((H, CP), lambda b: (0, 0)),
            pl.BlockSpec((1, CP), lambda b: (0, 0)),
        ],
        out_specs=pl.BlockSpec((None, 1, CP), lambda b: (b, 0, 0)),
        compiler_params=pltpu.CompilerParams(dimension_semantics=("parallel",)),
    )(emb, w_packed, bias_packed, fcw_pad, fcb_pad)
    return out[:, 0, :C]  # (B, C)


def rnf_forward_reference(batch, params, filter_width):
    """Pure-JAX reference mirroring the PyTorch module (eval mode)."""
    tokens, _ = batch
    emb = params["embedding"][tokens]  # (B, S, E)
    B, S, E = emb.shape
    W = filter_width
    T = S - W + 1
    H = params["w_hh"].shape[-1]

    idx = jnp.arange(T)[:, None] + jnp.arange(W)[None, :]
    chunks = emb[:, idx, :].reshape(B * T, W, E)  # (B*T, W, E)

    wih_t = jnp.transpose(params["w_ih"], (0, 2, 1))
    whh_t = jnp.transpose(params["w_hh"], (0, 2, 1))
    bias = params["b_ih"] + params["b_hh"]

    h = jnp.zeros((B * T, H), jnp.float32)
    c = jnp.zeros((B * T, H), jnp.float32)
    for w in range(W):
        x_t = chunks[:, w, :]
        z = [x_t @ wih_t[k] + h @ whh_t[k] + bias[k] for k in range(4)]
        i_g = jax.nn.sigmoid(z[0])
        f_g = jax.nn.sigmoid(z[1])
        g_g = jnp.tanh(z[2])
        o_g = jax.nn.sigmoid(z[3])
        c = f_g * c + i_g * g_g
        h = o_g * jnp.tanh(c)

    pooled = jnp.max(h.reshape(B, T, H), axis=1)  # max_pool1d over chunk axis
    return pooled @ params["fc_w"].T + params["fc_b"]


if __name__ == "__main__":
    # Small, consistent shapes: vocab=50, num_class=2, filter_width=3,
    # embed_dim = hidden_dim = 32 (the PyTorch module requires them equal),
    # batch=2, seq_len=8  ->  T = 6 chunks, packed gate width 4H = 128 lanes.
    V, C, FW, E, H = 50, 2, 3, 32, 32
    B, S = 2, 8

    key = jax.random.PRNGKey(0)
    ks = jax.random.split(key, 8)
    scale = 1.0 / np.sqrt(H)

    emb_table = jax.random.normal(ks[0], (V, E), jnp.float32)
    emb_table = emb_table.at[0].set(0.0)  # nn.Embedding(padding_idx=0)

    params = {
        "embedding": emb_table,
        "w_ih": jax.random.uniform(ks[1], (4, H, E), jnp.float32, -scale, scale),
        "w_hh": jax.random.uniform(ks[2], (4, H, H), jnp.float32, -scale, scale),
        "b_ih": jax.random.uniform(ks[3], (4, H), jnp.float32, -scale, scale),
        "b_hh": jax.random.uniform(ks[4], (4, H), jnp.float32, -scale, scale),
        "fc_w": jax.random.uniform(ks[5], (C, H), jnp.float32, -scale, scale),
        "fc_b": jax.random.uniform(ks[6], (C,), jnp.float32, -scale, scale),
    }

    tokens = jax.random.randint(ks[7], (B, S), 0, V)
    batch = (tokens, None)  # RNF.forward unpacks (inputs, _)

    logits = rnf_forward_pallas(batch, params, FW)
    logits = jax.block_until_ready(logits)

    ref = rnf_forward_reference(batch, params, FW)
    np.testing.assert_allclose(np.asarray(logits), np.asarray(ref),
                               atol=2e-2, rtol=2e-2)
    assert logits.shape == (B, C)
    print("KERNEL_OK")
</pallas_src>

<mosaic_0001>
module attributes {stable_mosaic.version = 11 : i64} {
  func.func @rnf_kernel(%arg0: i32, %arg1: memref<1x8x32xf32, #tpu.memory_space<vmem>>, %arg2: memref<64x128xf32, #tpu.memory_space<vmem>>, %arg3: memref<1x128xf32, #tpu.memory_space<vmem>>, %arg4: memref<32x128xf32, #tpu.memory_space<vmem>>, %arg5: memref<1x128xf32, #tpu.memory_space<vmem>>, %arg6: memref<1x1x128xf32, #tpu.memory_space<vmem>>) attributes {dimension_semantics = [#tpu.dimension_semantics<parallel>], iteration_bounds = array<i64: 2>, scalar_prefetch = 0 : i64, scratch_operands = 0 : i64, tpu.core_type = #tpu.core_type<tc>, window_params = [{transform_indices = @transform_0, window_bounds = array<i64: 1, 8, 32>}, {pipeline_mode = #tpu.pipeline_mode<synchronous>, transform_indices = @transform_1, window_bounds = array<i64: 64, 128>}, {pipeline_mode = #tpu.pipeline_mode<synchronous>, transform_indices = @transform_2, window_bounds = array<i64: 1, 128>}, {pipeline_mode = #tpu.pipeline_mode<synchronous>, transform_indices = @transform_3, window_bounds = array<i64: 32, 128>}, {pipeline_mode = #tpu.pipeline_mode<synchronous>, transform_indices = @transform_4, window_bounds = array<i64: 1, 128>}, {transform_indices = @transform_5, window_bounds = array<i64: 1, 1, 128>}]} {
    %cst = arith.constant 0.000000e+00 : f32
    %0 = vector.broadcast %cst : f32 to vector<6x32xf32>
    %cst_0 = arith.constant 0.000000e+00 : f32
    %1 = vector.broadcast %cst_0 : f32 to vector<6x32xf32>
    %c0 = arith.constant 0 : index
    %c0_1 = arith.constant 0 : index
    %2 = vector.load %arg2[%c0, %c0_1] : memref<64x128xf32, #tpu.memory_space<vmem>>, vector<64x128xf32>
    %c0_2 = arith.constant 0 : index
    %c0_3 = arith.constant 0 : index
    %3 = vector.load %arg3[%c0_2, %c0_3] : memref<1x128xf32, #tpu.memory_space<vmem>>, vector<1x128xf32>
    %c0_4 = arith.constant 0 : index
    %c0_5 = arith.constant 0 : index
    %c0_6 = arith.constant 0 : index
    %4 = vector.load %arg1[%c0_4, %c0_5, %c0_6] : memref<1x8x32xf32, #tpu.memory_space<vmem>>, vector<1x6x32xf32>
    %5 = vector.shape_cast %4 : vector<1x6x32xf32> to vector<6x32xf32>
    %6 = tpu.concatenate %5, %0 in 1 : vector<6x32xf32>, vector<6x32xf32> -> vector<6x64xf32>
    %cst_7 = arith.constant dense<0.000000e+00> : vector<6x128xf32>
    %7 = tpu.matmul %6, %2, %cst_7 {dimension_numbers = #tpu.dot_dimension_numbers<[1], [0], [0], [1], [0, 0, 1, 1], [], []>} : vector<6x64xf32>, vector<64x128xf32>, vector<6x128xf32> -> vector<6x128xf32>
    %8 = vector.broadcast %3 : vector<1x128xf32> to vector<6x128xf32>
    %9 = arith.addf %7, %8 : vector<6x128xf32>
    %10 = vector.extract_strided_slice %9 {offsets = [0, 0], sizes = [6, 32], strides = [1, 1]} : vector<6x128xf32> to vector<6x32xf32>
    %11 = arith.negf %10 : vector<6x32xf32>
    %12 = math.exp %11 : vector<6x32xf32>
    %cst_8 = arith.constant 1.000000e+00 : f32
    %13 = vector.broadcast %cst_8 : f32 to vector<6x32xf32>
    %14 = arith.addf %13, %12 : vector<6x32xf32>
    %15 = arith.divf %13, %14 : vector<6x32xf32>
    %16 = vector.extract_strided_slice %9 {offsets = [0, 32], sizes = [6, 32], strides = [1, 1]} : vector<6x128xf32> to vector<6x32xf32>
    %17 = arith.negf %16 : vector<6x32xf32>
    %18 = math.exp %17 : vector<6x32xf32>
    %cst_9 = arith.constant 1.000000e+00 : f32
    %19 = vector.broadcast %cst_9 : f32 to vector<6x32xf32>
    %20 = arith.addf %19, %18 : vector<6x32xf32>
    %21 = arith.divf %19, %20 : vector<6x32xf32>
    %22 = vector.extract_strided_slice %9 {offsets = [0, 64], sizes = [6, 32], strides = [1, 1]} : vector<6x128xf32> to vector<6x32xf32>
    %23 = math.tanh %22 : vector<6x32xf32>
    %24 = vector.extract_strided_slice %9 {offsets = [0, 96], sizes = [6, 32], strides = [1, 1]} : vector<6x128xf32> to vector<6x32xf32>
    %25 = arith.negf %24 : vector<6x32xf32>
    %26 = math.exp %25 : vector<6x32xf32>
    %cst_10 = arith.constant 1.000000e+00 : f32
    %27 = vector.broadcast %cst_10 : f32 to vector<6x32xf32>
    %28 = arith.addf %27, %26 : vector<6x32xf32>
    %29 = arith.divf %27, %28 : vector<6x32xf32>
    %30 = arith.mulf %21, %1 : vector<6x32xf32>
    %31 = arith.mulf %15, %23 : vector<6x32xf32>
    %32 = arith.addf %30, %31 : vector<6x32xf32>
    %33 = math.tanh %32 : vector<6x32xf32>
    %34 = arith.mulf %29, %33 : vector<6x32xf32>
    %c0_11 = arith.constant 0 : index
    %c1 = arith.constant 1 : index
    %c0_12 = arith.constant 0 : index
    %35 = vector.load %arg1[%c0_11, %c1, %c0_12] : memref<1x8x32xf32, #tpu.memory_space<vmem>>, vector<1x6x32xf32>
    %36 = vector.shape_cast %35 : vector<1x6x32xf32> to vector<6x32xf32>
    %37 = tpu.concatenate %36, %34 in 1 : vector<6x32xf32>, vector<6x32xf32> -> vector<6x64xf32>
    %cst_13 = arith.constant dense<0.000000e+00> : vector<6x128xf32>
    %38 = tpu.matmul %37, %2, %cst_13 {dimension_numbers = #tpu.dot_dimension_numbers<[1], [0], [0], [1], [0, 0, 1, 1], [], []>} : vector<6x64xf32>, vector<64x128xf32>, vector<6x128xf32> -> vector<6x128xf32>
    %39 = vector.broadcast %3 : vector<1x128xf32> to vector<6x128xf32>
    %40 = arith.addf %38, %39 : vector<6x128xf32>
    %41 = vector.extract_strided_slice %40 {offsets = [0, 0], sizes = [6, 32], strides = [1, 1]} : vector<6x128xf32> to vector<6x32xf32>
    %42 = arith.negf %41 : vector<6x32xf32>
    %43 = math.exp %42 : vector<6x32xf32>
    %cst_14 = arith.constant 1.000000e+00 : f32
    %44 = vector.broadcast %cst_14 : f32 to vector<6x32xf32>
    %45 = arith.addf %44, %43 : vector<6x32xf32>
    %46 = arith.divf %44, %45 : vector<6x32xf32>
    %47 = vector.extract_strided_slice %40 {offsets = [0, 32], sizes = [6, 32], strides = [1, 1]} : vector<6x128xf32> to vector<6x32xf32>
    %48 = arith.negf %47 : vector<6x32xf32>
    %49 = math.exp %48 : vector<6x32xf32>
    %cst_15 = arith.constant 1.000000e+00 : f32
    %50 = vector.broadcast %cst_15 : f32 to vector<6x32xf32>
    %51 = arith.addf %50, %49 : vector<6x32xf32>
    %52 = arith.divf %50, %51 : vector<6x32xf32>
    %53 = vector.extract_strided_slice %40 {offsets = [0, 64], sizes = [6, 32], strides = [1, 1]} : vector<6x128xf32> to vector<6x32xf32>
    %54 = math.tanh %53 : vector<6x32xf32>
    %55 = vector.extract_strided_slice %40 {offsets = [0, 96], sizes = [6, 32], strides = [1, 1]} : vector<6x128xf32> to vector<6x32xf32>
    %56 = arith.negf %55 : vector<6x32xf32>
    %57 = math.exp %56 : vector<6x32xf32>
    %cst_16 = arith.constant 1.000000e+00 : f32
    %58 = vector.broadcast %cst_16 : f32 to vector<6x32xf32>
    %59 = arith.addf %58, %57 : vector<6x32xf32>
    %60 = arith.divf %58, %59 : vector<6x32xf32>
    %61 = arith.mulf %52, %32 : vector<6x32xf32>
    %62 = arith.mulf %46, %54 : vector<6x32xf32>
    %63 = arith.addf %61, %62 : vector<6x32xf32>
    %64 = math.tanh %63 : vector<6x32xf32>
    %65 = arith.mulf %60, %64 : vector<6x32xf32>
    %c0_17 = arith.constant 0 : index
    %c2 = arith.constant 2 : index
    %c0_18 = arith.constant 0 : index
    %66 = vector.load %arg1[%c0_17, %c2, %c0_18] : memref<1x8x32xf32, #tpu.memory_space<vmem>>, vector<1x6x32xf32>
    %67 = vector.shape_cast %66 : vector<1x6x32xf32> to vector<6x32xf32>
    %68 = tpu.concatenate %67, %65 in 1 : vector<6x32xf32>, vector<6x32xf32> -> vector<6x64xf32>
    %cst_19 = arith.constant dense<0.000000e+00> : vector<6x128xf32>
    %69 = tpu.matmul %68, %2, %cst_19 {dimension_numbers = #tpu.dot_dimension_numbers<[1], [0], [0], [1], [0, 0, 1, 1], [], []>} : vector<6x64xf32>, vector<64x128xf32>, vector<6x128xf32> -> vector<6x128xf32>
    %70 = vector.broadcast %3 : vector<1x128xf32> to vector<6x128xf32>
    %71 = arith.addf %69, %70 : vector<6x128xf32>
    %72 = vector.extract_strided_slice %71 {offsets = [0, 0], sizes = [6, 32], strides = [1, 1]} : vector<6x128xf32> to vector<6x32xf32>
    %73 = arith.negf %72 : vector<6x32xf32>
    %74 = math.exp %73 : vector<6x32xf32>
    %cst_20 = arith.constant 1.000000e+00 : f32
    %75 = vector.broadcast %cst_20 : f32 to vector<6x32xf32>
    %76 = arith.addf %75, %74 : vector<6x32xf32>
    %77 = arith.divf %75, %76 : vector<6x32xf32>
    %78 = vector.extract_strided_slice %71 {offsets = [0, 32], sizes = [6, 32], strides = [1, 1]} : vector<6x128xf32> to vector<6x32xf32>
    %79 = arith.negf %78 : vector<6x32xf32>
    %80 = math.exp %79 : vector<6x32xf32>
    %cst_21 = arith.constant 1.000000e+00 : f32
    %81 = vector.broadcast %cst_21 : f32 to vector<6x32xf32>
    %82 = arith.addf %81, %80 : vector<6x32xf32>
    %83 = arith.divf %81, %82 : vector<6x32xf32>
    %84 = vector.extract_strided_slice %71 {offsets = [0, 64], sizes = [6, 32], strides = [1, 1]} : vector<6x128xf32> to vector<6x32xf32>
    %85 = math.tanh %84 : vector<6x32xf32>
    %86 = vector.extract_strided_slice %71 {offsets = [0, 96], sizes = [6, 32], strides = [1, 1]} : vector<6x128xf32> to vector<6x32xf32>
    %87 = arith.negf %86 : vector<6x32xf32>
    %88 = math.exp %87 : vector<6x32xf32>
    %cst_22 = arith.constant 1.000000e+00 : f32
    %89 = vector.broadcast %cst_22 : f32 to vector<6x32xf32>
    %90 = arith.addf %89, %88 : vector<6x32xf32>
    %91 = arith.divf %89, %90 : vector<6x32xf32>
    %92 = arith.mulf %83, %63 : vector<6x32xf32>
    %93 = arith.mulf %77, %85 : vector<6x32xf32>
    %94 = arith.addf %92, %93 : vector<6x32xf32>
    %95 = math.tanh %94 : vector<6x32xf32>
    %96 = arith.mulf %91, %95 : vector<6x32xf32>
    %cst_23 = arith.constant dense<0xFF800000> : vector<32xf32>
    %97 = vector.multi_reduction <maximumf>, %96, %cst_23 [0] : vector<6x32xf32> to vector<32xf32>
    %98 = vector.shape_cast %97 : vector<32xf32> to vector<1x32xf32>
    %c0_24 = arith.constant 0 : index
    %c0_25 = arith.constant 0 : index
    %99 = vector.load %arg4[%c0_24, %c0_25] : memref<32x128xf32, #tpu.memory_space<vmem>>, vector<32x128xf32>
    %cst_26 = arith.constant dense<0.000000e+00> : vector<1x128xf32>
    %100 = tpu.matmul %98, %99, %cst_26 {dimension_numbers = #tpu.dot_dimension_numbers<[1], [0], [0], [1], [0, 0, 1, 1], [], []>} : vector<1x32xf32>, vector<32x128xf32>, vector<1x128xf32> -> vector<1x128xf32>
    %c0_27 = arith.constant 0 : index
    %c0_28 = arith.constant 0 : index
    %101 = vector.load %arg5[%c0_27, %c0_28] : memref<1x128xf32, #tpu.memory_space<vmem>>, vector<1x128xf32>
    %102 = arith.addf %100, %101 : vector<1x128xf32>
    %c0_29 = arith.constant 0 : index
    %c0_30 = arith.constant 0 : index
    %c0_31 = arith.constant 0 : index
    %103 = vector.load %arg6[%c0_29, %c0_30, %c0_31] : memref<1x1x128xf32, #tpu.memory_space<vmem>>, vector<1x1x128xf32>
    %104 = vector.shape_cast %103 : vector<1x1x128xf32> to vector<1x128xf32>
    %105 = vector.shape_cast %102 : vector<1x128xf32> to vector<1x1x128xf32>
    tpu.vector_store %arg6[%c0_29, %c0_30, %c0_31], %105 {strides = array<i32>} : memref<1x1x128xf32, #tpu.memory_space<vmem>>, vector<1x1x128xf32>,
    return
  }
  func.func @transform_0(%arg0: i32) -> (i32, i32, i32) {
    %c0_i32 = arith.constant 0 : i32
    %c0_i32_0 = arith.constant 0 : i32
    %c0_i32_1 = arith.constant 0 : i32
    return %arg0, %c0_i32, %c0_i32_0 : i32, i32, i32
  }
  func.func @transform_1(%arg0: i32) -> (i32, i32) {
    %c0_i32 = arith.constant 0 : i32
    %c0_i32_0 = arith.constant 0 : i32
    %c0_i32_1 = arith.constant 0 : i32
    return %c0_i32, %c0_i32_0 : i32, i32
  }
  func.func @transform_2(%arg0: i32) -> (i32, i32) {
    %c0_i32 = arith.constant 0 : i32
    %c0_i32_0 = arith.constant 0 : i32
    %c0_i32_1 = arith.constant 0 : i32
    return %c0_i32, %c0_i32_0 : i32, i32
  }
  func.func @transform_3(%arg0: i32) -> (i32, i32) {
    %c0_i32 = arith.constant 0 : i32
    %c0_i32_0 = arith.constant 0 : i32
    %c0_i32_1 = arith.constant 0 : i32
    return %c0_i32, %c0_i32_0 : i32, i32
  }
  func.func @transform_4(%arg0: i32) -> (i32, i32) {
    %c0_i32 = arith.constant 0 : i32
    %c0_i32_0 = arith.constant 0 : i32
    %c0_i32_1 = arith.constant 0 : i32
    return %c0_i32, %c0_i32_0 : i32, i32
  }
  func.func @transform_5(%arg0: i32) -> (i32, i32, i32) {
    %c0_i32 = arith.constant 0 : i32
    %c0_i32_0 = arith.constant 0 : i32
    %c0_i32_1 = arith.constant 0 : i32
    return %arg0, %c0_i32, %c0_i32_0 : i32, i32, i32
  }
}

</mosaic_0001>

<bundles_post_ra>
// kernel: tpu_custom_call.1
= control target key start
LH: loop header
LB: loop body
LE: loop exit
PB: predicated region body
PF: predicated region fallthrough
CT: control target
= control target key end

     0   :  { %10 = vsyncpa [#allocation3], 0  ;;  %s1520_s0 = inlined_call_operand.hbm [shape: f32[2,8,32], index: 0, kind: input, shape index: {}]   ;;  %s1521_s1 = inlined_call_operand.hbm [shape: f32[64,128], index: 1, kind: input, shape index: {}]   ;;  %s1522_s2 = inlined_call_operand.vmem [shape: f32[1,128], index: 2, kind: input, shape index: {}]   ;;  %s1523_s3 = inlined_call_operand.hbm [shape: f32[32,128], index: 3, kind: input, shape index: {}]   ;;  %s1524_s4 = inlined_call_operand.vmem [shape: f32[1,128], index: 4, kind: input, shape index: {}]   ;;  %s1525_s5 = inlined_call_operand.hbm [shape: f32[2,1,128], index: 5, kind: output, shape index: {}]  }
   0x1   :  { %12 = vsyncpa [#allocation3 + $0x1], 0 }
   0x2   :  { %13 = vsyncpa [#allocation6], 0 }
   0x3   :  { %14 = vsyncpa [#allocation4], 0 }
   0x4   :  { %16 = vsyncpa [#allocation4 + $0x1], 0  ;;  %s1238_s18 = smov 0   ;;  %s1240_s19 = smov 0  }
   0x5   :  { %s1242_s20 = smov 0   ;;  %s1244_s21 = smov 0  }
   0x6 LB: > { %s1259_s22 = sadd.s32 4294967295, %s1195_s21   ;;  %s777_s23 = sadd.s32 4294967294, %s1195_s21   ;;  %s1195_s21 = sphi %s1244_s21, %s1545_s21   ;;  %s1191_s20 = sphi %s1242_s20, %s1544_s20   ;;  %s1187_s19 = sphi %s1240_s19, %s1543_s19   ;;  %s1183_s18 = sphi %s1238_s18, %s1542_s18  }
   0x7   : > { %p42_p0 = scmp.ne.s32.totalorder %s1187_s19, %s1183_s18  ;;  %p1526_p1 = scmp.eq.s32.totalorder %s1259_s22, 0 }
   0x8   : > { %p156_p3 = scmp.eq.s32.totalorder %s777_s23, 1  ;;  %p778_p5 = scmp.ge.s32.totalorder %s1195_s21, 1 }
   0x9   : > { %p1268_p4 = por %p1526_p1, %p42_p0  ;;  %p163_p7 = scmp.lt.s32.totalorder %s1195_s21, 3 }
   0xa   : > { %p1273_p6 = por %p156_p3, %p42_p0  ;;  %s1197_s27 = smov [#allocation5]  }
   0xb   : > { %s1529_s24 = scalar_select %p1268_p4, 1, 0 }
   0xc   : > { %s1530_s25 = scalar_select %p1273_p6, 1, 0 }
   0xd   : > { %p1278_p8 = pnand %p778_p5, %p163_p7  ;;  %s175_s28 = sshll.u32 %s1197_s27, 4  ;;  %s1282_s28 = int_to_ptr.vmem [resolvable:$true] %s175_s28 }
   0xe   : > { %s1198_s30 = smov [#allocation7]   ;;  %s1039_s9 = scalar_lea.hbm %s1521_s1, 1024 }
   0xf   : > { %p953_p9 = pneg %p1278_p8  ;;  %s191_s6 = sshll.u32 %s1198_s30, 4  ;;  %s1293_s6 = int_to_ptr.vmem [resolvable:$true] %s191_s6 }
  0x10   : > { %p1040_p12 = scmp.ne.s32.totalorder %s1521_s1, %s1039_s9  ;;  %p1046_p5 = scmp.lt.u32.totalorder %s1039_s9, %s1521_s1 }
  0x11   : > { %p1289_p11 = pnand %p953_p9, %p1526_p1 }
  0x13   : > { %p1041_p13 = pneg %p1289_p11 }
  0x15   : > { %p1042_p0 = pnand %p1041_p13, %p1040_p12 }
  0x17   : > { %p1043_p3 = pneg %p1042_p0 }
  0x19   : > { %p1048_p7 = pnand %p1046_p5, %p1043_p3 }
  0x1b   : > { %1051 = shalt.err (!%p1048_p7)
}
  0x1c   : > { %s1052_s14 = scalar_lea.vmem %s1282_s28, 1024  ;;  %p1060_p2 = scmp.lt.s32.totalorder %s1282_s28, %s1282_s28 }
  0x1d   : > { %p1053_p9 = scmp.ne.s32.totalorder %s1282_s28, %s1052_s14  ;;  %p1061_p12 = scmp.lt.s32.totalorder %s1052_s14, %s1052_s14 }
  0x1f   : > { %p1055_p10 = pnand %p1053_p9, %p1041_p13  ;;  %p1062_p0 = por %p1061_p12, %p1060_p2 }
  0x21   : > { %p1056_p1 = pneg %p1055_p10 }
  0x23   : > { %p1063_p6 = pnand %p1062_p0, %p1056_p1 }
  0x25   : > { %1066 = shalt.err (!%p1063_p6)
}
  0x26   : > { %s1199_s15 = smov 128   ;;  %s1200_s16 = smov 8  }
  0x27   : > { %956 = dma.hbm_to_vmem [thread:$0]  (!%p1289_p11), %s1521_s1, 1024, %s1282_s28, [#allocation6], %s1199_s15, %s1199_s15, %s1200_s16  }
  0x28   : > { %s1067_s7 = scalar_lea.hbm %s1523_s3, 512 }
  0x29   : > { %p1068_p2 = scmp.ne.s32.totalorder %s1523_s3, %s1067_s7  ;;  %p1074_p10 = scmp.lt.u32.totalorder %s1067_s7, %s1523_s3 }
  0x2b   : > { %p1070_p1 = pnand %p1068_p2, %p1041_p13 }
  0x2d   : > { %p1071_p6 = pneg %p1070_p1 }
  0x2f   : > { %p1076_p3 = pnand %p1074_p10, %p1071_p6 }
  0x31   : > { %1079 = shalt.err (!%p1076_p3)
}
  0x32   : > { %s1080_s28 = scalar_lea.vmem %s1293_s6, 512  ;;  %p1088_p12 = scmp.lt.s32.totalorder %s1293_s6, %s1293_s6 }
  0x33   : > { %p1081_p5 = scmp.ne.s32.totalorder %s1293_s6, %s1080_s28  ;;  %p1089_p0 = scmp.lt.s32.totalorder %s1080_s28, %s1080_s28 }
  0x35   : > { %p1083_p7 = pnand %p1081_p5, %p1041_p13  ;;  %p1090_p2 = por %p1089_p0, %p1088_p12 }
  0x37   : > { %p1084_p9 = pneg %p1083_p7 }
  0x39   : > { %p1091_p1 = pnand %p1090_p2, %p1084_p9 }
  0x3b   : > { %1094 = shalt.err (!%p1091_p1)
}
  0x3c   : > { %959 = dma.hbm_to_vmem [thread:$0]  (!%p1289_p11), %s1523_s3, 512, %s1293_s6, [#allocation6], %s1199_s15, %s1199_s15, %s1200_s16  }
  0x3d   : > { %s1348_s14 = sadd.s32 1, %s1195_s21   ;;  %s29_s29 = sadd.s32 1, %s1191_s20 }
  0x3e   : > { %s26_s17 = ssub.s32 %s1195_s21, %s1348_s14  ;;  %p36_p13 = scmp.ne.s32.totalorder %s1191_s20, %s1187_s19 }
  0x3f   : > { %p27_p6 = scmp.eq.s32.totalorder %s26_s17, 0  ;;  %p37_p10 = scmp.eq.s32.totalorder %s1195_s21, 0 }
  0x40   : > { %p1533_p3 = scmp.eq.s32.totalorder %s1259_s22, 1  ;;  %p970_p7 = scmp.lt.s32.totalorder %s1195_s21, 2 }
  0x41   : > { %s1364_s27 = scalar_select %p27_p6, %s1191_s20, %s29_s29  }
  0x42   : > { %p1358_p5 = por %p1533_p3, %p36_p13  ;;  %p38_p9 = por %p37_p10, %p36_p13 }
  0x43   : > { %s208_s30 = sand.u32 1, %s1191_s20   ;;  %s783_s6 = sshll.u32 %s1195_s21, 7 }
  0x44   : > { %s1534_s23 = scalar_select %p1358_p5, 1, 0 }
  0x45   : > { %s782_s7 = sshll.u32 %s208_s30, 3  ;;  %s1371_s8 = scalar_lea.hbm %s1520_s0, %s783_s6 }
  0x46   : > { %s212_s9 = scalar_lea.vmem [#allocation2], %s782_s7  ;;  %p1375_p11 = pnand %p970_p7, %p38_p9 }
  0x47   : > { %s219_s10 = sshll.u32 %s212_s9, 4  ;;  %s209_s28 = scalar_lea.sflag [#allocation3], %s208_s30  ;;  %s1373_s10 = int_to_ptr.vmem [resolvable:$true] %s219_s10 }
  0x48   : > { %s1095_s12 = scalar_lea.hbm %s1371_s8, 128  ;;  %p1097_p0 = pneg %p1375_p11 }
  0x49   : > { %p1096_p12 = scmp.ne.s32.totalorder %s1371_s8, %s1095_s12  ;;  %s1100_s17 = scalar_lea.hbm %s1520_s0, 256 }
  0x4a   : > { %p1101_p13 = scmp.lt.u32.totalorder %s1371_s8, %s1520_s0  ;;  %p1102_p6 = scmp.lt.u32.totalorder %s1100_s17, %s1095_s12 }
  0x4b   : > { %p1098_p2 = pnand %p1097_p0, %p1096_p12  ;;  %p1104_p3 = scmp.lt.u32.totalorder %s1095_s12, %s1371_s8 }
  0x4c   : > { %p1103_p10 = por %p1102_p6, %p1101_p13 }
  0x4d   : > { %p1099_p1 = pneg %p1098_p2 }
  0x4e   : > { %p1105_p7 = por %p1104_p3, %p1103_p10 }
  0x50   : > { %p1106_p9 = pnand %p1105_p7, %p1099_p1 }
  0x52   : > { %1109 = shalt.err (!%p1106_p9)
}
  0x53   : > { %s1110_s30 = scalar_lea.vmem %s1373_s10, 128  ;;  %s1201_s15 = smov [#allocation2]  }
  0x54   : > { %p1111_p12 = scmp.ne.s32.totalorder %s1373_s10, %s1110_s30  ;;  %s1115_s16 = sshll.u32 %s1201_s15, 4  ;;  %s1116_s16 = int_to_ptr.vmem [resolvable:$false] %s1115_s16 }
  0x55   : > { %s1117_s9 = scalar_lea.vmem %s1116_s16, 256  ;;  %p1118_p4 = scmp.lt.s32.totalorder %s1373_s10, %s1116_s16 }
  0x56   : > { %p1113_p2 = pnand %p1111_p12, %p1097_p0  ;;  %p1119_p13 = scmp.lt.s32.totalorder %s1117_s9, %s1110_s30 }
  0x58   : > { %p1114_p5 = pneg %p1113_p2  ;;  %p1120_p6 = por %p1119_p13, %p1118_p4 }
  0x5a   : > { %p1121_p10 = pnand %p1120_p6, %p1114_p5 }
  0x5c   : > { %1124 = shalt.err (!%p1121_p10)
}
  0x5d   : > { %963 = dma.hbm_to_vmem [thread:$0]  (!%p1375_p11), %s1371_s8, 128, %s1373_s10, %s209_s28  }
  0x5e   : > { %228 = sbr.rel (%p1278_p8) target bundleno = 2472 (0x9a8), region = 40  ;;  %s1407_s12 = sand.u32 (!%p1278_p8), 1, %s1187_s19  }
  0x5f   : > { %s785_s13 = sshll.u32 (!%p1278_p8), %s1407_s12, 3  ;;  %s231_s29 = scalar_lea.sflag (!%p1278_p8), [#allocation3], %s1407_s12 }
  0x60   : > { %s1411_s17 = scalar_lea.vmem (!%p1278_p8), [#allocation2], %s785_s13  ;;  %p1536_p4 = scmp.ne.s32.totalorder (!%p1278_p8), %s1529_s24, 0 }
  0x65   : > { %1170 = dma.done.wait (%p1536_p4), %s231_s29, 128  }
  0x66   : > { %1172 = vsyncadd (%p1536_p4), %s231_s29, 4294967168  ;;  %p1537_p5 = scmp.eq.s32.totalorder %s1259_s22, 0 }
  0x68   : > { %1174 = dma.done.wait (%p1537_p5), [#allocation6], 1536   ;;  %p1538_p8 = pmov %p1537_p5 }
  0x69   : > { %v1202_v0 = vmov 0.0|0.0   ;;  %vm1203_vm0 = vmmov 0   ;;  %v1204_v1 = vmov 0.0   ;;  %v268_v2 = vld [vmem:[#allocation5] sm:$0xff]  ;;  %v269_v3 = vld [vmem:[#allocation5 + $0x8] sm:$0xff]  ;;  %v270_v4 = vld [vmem:[#allocation5 + $0x10] sm:$0xff] }
  0x6a   : > { %1176 = vsyncadd (%p1538_p8), [#allocation6], 4294965760  ;;  %899 = vmatprep.subr.bf16.mxu0 %v1202_v0  ;;  %847 = vmatprep.mubr.msk.f32.mxu0 %vm1203_vm0, %v1204_v1  ;;  %v900_v5 = vpack.c.bf16 %v269_v3, %v268_v2  ;;  %v271_v6 = vld [vmem:[#allocation5 + $0x18] sm:$0xff]  ;;  %v272_v8 = vld [vmem:[#allocation5 + $0x20] sm:$0xff]  ;;  %vm278_vm1 = vcmask 261120   ;;  %vm286_vm2 = vcmask 523264  }
  0x6b   : > { %911 = vmatprep.subr.bf16.mxu1 %v1202_v0  ;;  %866 = vmatprep.mubr.msk.f32.mxu1 %vm1203_vm0, %v1204_v1  ;;  %v903_v7 = vpack.c.bf16 %v271_v6, %v270_v4  ;;  %v273_v9 = vld [vmem:[#allocation5 + $0x28] sm:$0xff]  ;;  %v274_v11 = vld [vmem:[#allocation5 + $0x30] sm:$0xff]  ;;  %v275_v12 = vld [vmem:[#allocation5 + $0x38] sm:$0xff]  ;;  %s1205_s8 = smov 64   ;;  %s1206_s10 = smov 32   ;;  %vm590_vm3 = vcmask 1046272  }
  0x6c   : > { %901 = vmatpush3.bf16.msra.mxu0 %v900_v5  ;;  %913 = vmatpush3.bf16.msra.mxu1 %v900_v5  ;;  %v906_v10 = vpack.c.bf16 %v273_v9, %v272_v8  ;;  %v909_v13 = vpack.c.bf16 %v275_v12, %v274_v11  ;;  %v277_v14 = vld [vmem:[%s1411_s17] sm:$0x3f]  ;;  %v598_v6 = vld [vmem:[#allocation7] sm:$0xff]  ;;  %s796_s7 = sshll.u32 %s1259_s22, 4  ;;  %s267_s6 = scalar_lea.vmem [#allocation8], %s1407_s12 }
  0x6d   : > { %902 = vmatprep.subr.bf16.mxu0 %v1202_v0  ;;  %914 = vmatprep.subr.bf16.mxu1 %v1202_v0  ;;  %v279_v15 = vsel %vm278_vm1, %v277_v14, 0.0  ;;  %v788_v16 = vld [vmem:[%s1522_s2] ss:$0 sm:$0xff]  ;;  %v384_v33 = vld [vmem:[%s1411_s17 + $0x1] sm:$0x3f]  ;;  %s692_s30 = sshll.u32 %s267_s6, 4  ;;  %s1476_s9 = scalar_lea.hbm %s1525_s5, %s796_s7  ;;  %s1478_s30 = int_to_ptr.vmem [resolvable:$true] %s692_s30 }
  0x6e   : > { %v487_v52 = vld [vmem:[%s1411_s17 + $0x2] sm:$0x3f]  ;;  %s680_s13 = scalar_lea.sflag [#allocation4], %s1407_s12  ;;  %s1125_s29 = scalar_lea.vmem %s1478_s30, 16 }
  0x6f   : > { %v600_v8 = vld [vmem:[#allocation7 + $0x10] sm:$0xff]  ;;  %p1126_p11 = scmp.ne.s32.totalorder %s1478_s30, %s1125_s29  ;;  %p1539_p0 = scmp.ne.s32.totalorder %s1534_s23, 0 }
  0x70   : > { %904 = vmatpush3.bf16.msra.mxu0 %v903_v7  ;;  %916 = vmatpush3.bf16.msra.mxu1 %v903_v7  ;;  %s1207_s22 = smov [#allocation8]  }
  0x71   : > { %905 = vmatprep.subr.bf16.mxu0 %v1202_v0  ;;  %917 = vmatprep.subr.bf16.mxu1 %v1202_v0  ;;  %p1127_p1 = pnand %p1126_p11, %p1539_p0  ;;  %s1129_s17 = sshll.u32 %s1207_s22, 4  ;;  %s1130_s17 = int_to_ptr.vmem [resolvable:$false] %s1129_s17 }
  0x72   : > { %s1131_s24 = scalar_lea.vmem %s1130_s17, 32  ;;  %p1132_p7 = scmp.lt.s32.totalorder %s1478_s30, %s1130_s17 }
  0x73   : > { %p1128_p3 = pneg %p1127_p1  ;;  %p1133_p9 = scmp.lt.s32.totalorder %s1131_s24, %s1125_s29 }
  0x74   : > { %907 = vmatpush3.bf16.msra.mxu0 %v906_v10  ;;  %919 = vmatpush3.bf16.msra.mxu1 %v906_v10 }
  0x75   : > { %908 = vmatprep.subr.bf16.mxu0 %v1202_v0  ;;  %920 = vmatprep.subr.bf16.mxu1 %v1202_v0  ;;  %p1134_p12 = por %p1133_p9, %p1132_p7 }
  0x77   : > { %p1135_p2 = pnand %p1134_p12, %p1128_p3 }
  0x78   : > { %910 = vmatpush3.bf16.msra.mxu0 %v909_v13  ;;  %922 = vmatpush3.bf16.msra.mxu1 %v909_v13 }
  0x79   : > { %923 = vmatprep.subr.bf16.mxu0 %v1202_v0  ;;  %935 = vmatprep.subr.bf16.mxu1 %v1202_v0 }
  0x7b   : > { %848 = vmatmul.mubr.msk.f32.vlgmr.msra.gmra.mrb[0].mxu0 %vm286_vm2, %v279_v15 }
  0x7c   : > { %925 = vmatpush3.bf16.msra.mxu0 %v900_v5  ;;  %885 = vmatprep.mubr.msk.f32.mxu0 %vm1203_vm0, %v1204_v1 }
  0x7d   : > { %926 = vmatprep.subr.bf16.mxu0 %v1202_v0 }
  0x80   : > { %928 = vmatpush3.bf16.msra.mxu0 %v903_v7  ;;  %v599_v7 = vld [vmem:[#allocation7 + $0x8] sm:$0xff] }
  0x81   : > { %929 = vmatprep.subr.bf16.mxu0 %v1202_v0  ;;  %v936_v9 = vpack.c.bf16 %v599_v7, %v598_v6 }
  0x84   : > { %931 = vmatpush3.bf16.msra.mxu0 %v906_v10  ;;  %v601_v10 = vld [vmem:[#allocation7 + $0x18] sm:$0xff] }
  0x85   : > { %932 = vmatprep.subr.bf16.mxu0 %v1202_v0  ;;  %v939_v11 = vpack.c.bf16 %v601_v10, %v600_v8 }
  0x88   : > { %934 = vmatpush3.bf16.msra.mxu0 %v909_v13 }
 0x14e   : > { %v356_v17 = vpop.f32.mrb[0].mxu0 }
 0x14f   : > { %v357_v18 = vadd.f32 %v788_v16, %v356_v17  ;;  %v849_v19 = vpop.f32.mrb[1].mxu0 }
 0x151   : > { %1015 = vtanh.f32 %v357_v18  ;;  %v790_v21 = vmul.f32 -1.442695, %v357_v18 }
 0x153   : > { %1017 = vpow2.f32 %v790_v21 }
 0x15b   : > { %v1016_v20 = vpop.eup %1015 }
 0x15c   : > { %369 = vrot.lane.b32.xlu0 %v1016_v20, %s1205_s8 }
 0x15d   : > { %v1018_v22 = vpop.eup %1017 }
 0x15e   : > { %v363_v23 = vadd.f32 1.0, %v1018_v22 }
 0x160   : > { %1019 = vrcp.f32 %v363_v23 }
 0x16a   : > { %v1020_v24 = vpop.eup %1019 }
 0x16b   : > { %v367_v27 = vmul.f32 0.0, %v1020_v24 }
 0x1ce   : > { %v370_v25 = vpop.permute.xlu0 %369 }
 0x1cf   : > { %v372_v26 = vmul.f32 %v1020_v24, %v370_v25 }
 0x1d1   : > { %374 = vrot.lane.b32.xlu0 %v372_v26, %s1206_s10 }
 0x243   : > { %v375_v28 = vpop.permute.xlu0 %374 }
 0x244   : > { %v377_v29 = vadd.f32 %v375_v28, %v367_v27 }
 0x246   : > { %1021 = vtanh.f32 %v377_v29 }
 0x250   : > { %v1022_v30 = vpop.eup %1021 }
 0x251   : > { %380 = vrot.lane.b32.xlu1 %v1022_v30, %s1205_s8 }
 0x2c3   : > { %v381_v31 = vpop.permute.xlu1 %380 }
 0x2c4   : > { %v383_v32 = vmul.f32 %v1020_v24, %v381_v31 }
 0x2c6   : > { %386 = vrot.lane.b32.xlu1 %v383_v32, %s1205_s8 }
 0x338   : > { %v387_v34 = vpop.permute.xlu1 %386 }
 0x339   : > { %v389_v35 = vsel %vm278_vm1, %v384_v33, %v387_v34 }
 0x33a   : > { %867 = vmatmul.mubr.msk.f32.vlgmr.msra.gmra.mrb[0].mxu1 %vm286_vm2, %v389_v35 }
 0x33b   : > { %896 = vmatprep.mubr.msk.f32.mxu1 %vm1203_vm0, %v1204_v1  ;;  %937 = vmatpush3.bf16.msra.mxu1 %v936_v9 }
 0x33c   : > { %938 = vmatprep.subr.bf16.mxu1 %v1202_v0  ;;  %v602_v0 = vld [vmem:[%s1524_s4] sm:$0x1] }
 0x33f   : > { %940 = vmatpush3.bf16.msra.mxu1 %v939_v11 }
 0x40d   : > { %v459_v36 = vpop.f32.mrb[0].mxu1 }
 0x40e   : > { %v460_v37 = vadd.f32 %v788_v16, %v459_v36  ;;  %v868_v38 = vpop.f32.mrb[1].mxu1 }
 0x410   : > { %1023 = vtanh.f32 %v460_v37  ;;  %v792_v40 = vmul.f32 -1.442695, %v460_v37 }
 0x412   : > { %1025 = vpow2.f32 %v792_v40 }
 0x41a   : > { %v1024_v39 = vpop.eup %1023 }
 0x41b   : > { %472 = vrot.lane.b32.xlu0 %v1024_v39, %s1205_s8 }
 0x41c   : > { %v1026_v41 = vpop.eup %1025 }
 0x41d   : > { %v466_v42 = vadd.f32 1.0, %v1026_v41 }
 0x41f   : > { %1027 = vrcp.f32 %v466_v42 }
 0x429   : > { %v1028_v43 = vpop.eup %1027 }
 0x42a   : > { %v470_v46 = vmul.f32 %v1028_v43, %v377_v29 }
 0x48d   : > { %v473_v44 = vpop.permute.xlu0 %472 }
 0x48e   : > { %v475_v45 = vmul.f32 %v1028_v43, %v473_v44 }
 0x490   : > { %477 = vrot.lane.b32.xlu1 %v475_v45, %s1206_s10 }
 0x502   : > { %v478_v47 = vpop.permute.xlu1 %477 }
 0x503   : > { %v480_v48 = vadd.f32 %v478_v47, %v470_v46 }
 0x505   : > { %1029 = vtanh.f32 %v480_v48 }
 0x50f   : > { %v1030_v49 = vpop.eup %1029 }
 0x510   : > { %483 = vrot.lane.b32.xlu0 %v1030_v49, %s1205_s8 }
 0x582   : > { %v484_v50 = vpop.permute.xlu0 %483 }
 0x583   : > { %v486_v51 = vmul.f32 %v1028_v43, %v484_v50 }
 0x585   : > { %489 = vrot.lane.b32.xlu1 %v486_v51, %s1205_s8 }
 0x5f7   : > { %v490_v53 = vpop.permute.xlu1 %489 }
 0x5f8   : > { %v492_v54 = vsel %vm278_vm1, %v487_v52, %v490_v53 }
 0x5f9   : > { %886 = vmatmul.mubr.msk.f32.vlgmr.msra.gmra.mrb[2].mxu0 %vm286_vm2, %v492_v54 }
 0x6cc   : > { %v562_v55 = vpop.f32.mrb[2].mxu0 }
 0x6cd   : > { %v563_v56 = vadd.f32 %v788_v16, %v562_v55  ;;  %v887_v57 = vpop.f32.mrb[3].mxu0 }
 0x6cf   : > { %1031 = vtanh.f32 %v563_v56  ;;  %v794_v59 = vmul.f32 -1.442695, %v563_v56 }
 0x6d1   : > { %1033 = vpow2.f32 %v794_v59 }
 0x6d9   : > { %v1032_v58 = vpop.eup %1031 }
 0x6da   : > { %575 = vrot.lane.b32.xlu0 %v1032_v58, %s1205_s8 }
 0x6db   : > { %v1034_v60 = vpop.eup %1033 }
 0x6dc   : > { %v569_v61 = vadd.f32 1.0, %v1034_v60 }
 0x6de   : > { %1035 = vrcp.f32 %v569_v61 }
 0x6e8   : > { %v1036_v62 = vpop.eup %1035 }
 0x6e9   : > { %v573_v2 = vmul.f32 %v1036_v62, %v480_v48 }
 0x74c   : > { %v576_v63 = vpop.permute.xlu0 %575 }
 0x74d   : > { %v578_v1 = vmul.f32 %v1036_v62, %v576_v63 }
 0x74f   : > { %580 = vrot.lane.b32.xlu1 %v578_v1, %s1206_s10 }
 0x7c1   : > { %v581_v3 = vpop.permute.xlu1 %580 }
 0x7c2   : > { %v583_v4 = vadd.f32 %v581_v3, %v573_v2 }
 0x7c4   : > { %1037 = vtanh.f32 %v583_v4 }
 0x7ce   : > { %v1038_v5 = vpop.eup %1037 }
 0x7cf   : > { %586 = vrot.lane.b32.xlu0 %v1038_v5, %s1205_s8 }
 0x841   : > { %v587_v12 = vpop.permute.xlu0 %586 }
 0x842   : > { %v589_v13 = vmul.f32 %v1036_v62, %v587_v12 }
 0x844   : > { %v591_v14 = vsel %vm590_vm3, %v589_v13, -inf }
 0x845   : > { %v592_v15 = vrot.slane %v591_v14, 4 }
 0x847   : > { %v593_v16 = vmax.f32 %v591_v14, %v592_v15 }
 0x849   : > { %v594_v17 = vrot.slane %v593_v16, 2 }
 0x84b   : > { %v595_v18 = vmax.f32 %v593_v16, %v594_v17 }
 0x84d   : > { %v596_v19 = vrot.slane %v595_v18, 1 }
 0x84f   : > { %v597_v20 = vmax.f32 %v595_v18, %v596_v19 }
 0x851   : > { %604 = vrot.lane.b32.xlu1 %v597_v20, %s1206_s10 }
 0x8c3   : > { %v605_v21 = vpop.permute.xlu1 %604 }
 0x8c4   : > { %897 = vmatmul.mubr.msk.f32.vlgmr.msra.gmra.mrb[2].mxu1 %vm278_vm1, %v605_v21 }
 0x997   : > { %v674_v22 = vpop.f32.mrb[2].mxu1 }
 0x998   : > { %v675_v23 = vadd.f32 %v674_v22, %v602_v0  ;;  %v898_v24 = vpop.f32.mrb[3].mxu1 }
 0x99a   : > { %678 = vst [vmem:[%s267_s6] sm:$0x1] %v675_v23 }
 0x99b   : > { %1138 = shalt.err (!%p1135_p2)
}
 0x99c   : > { %s1139_s12 = scalar_lea.hbm %s1476_s9, 16  ;;  %s1143_s10 = scalar_lea.hbm %s1525_s5, 32 }
 0x99d   : > { %p1140_p13 = scmp.ne.s32.totalorder %s1476_s9, %s1139_s12  ;;  %p1144_p4 = scmp.lt.u32.totalorder %s1476_s9, %s1525_s5 }
 0x99e   : > { %p1145_p5 = scmp.lt.u32.totalorder %s1143_s10, %s1139_s12  ;;  %p1147_p11 = scmp.lt.u32.totalorder %s1139_s12, %s1476_s9 }
 0x99f   : > { %p1141_p6 = pnand %p1140_p13, %p1539_p0 }
 0x9a0   : > { %p1146_p8 = por %p1145_p5, %p1144_p4 }
 0x9a1   : > { %p1142_p10 = pneg %p1141_p6 }
 0x9a2   : > { %p1148_p1 = por %p1147_p11, %p1146_p8 }
 0x9a4   : > { %p1149_p3 = pnand %p1148_p1, %p1142_p10 }
 0x9a6   : > { %1152 = shalt.err (!%p1149_p3)
}
 0x9a7   : > { %951 = dma.vmem_to_hbm [thread:$0]  (%p1539_p0), %s1478_s30, 16, %s1476_s9, %s680_s13  }
 0x9a8 PF: > { %s704_s7 = sand.u32 1, %s1183_s18   ;;  %p1540_p7 = scmp.ne.s32.totalorder %s1530_s25, 0 }
 0x9a9   : > { %p1541_p9 = scmp.ge.s32.totalorder %s1195_s21, 2  ;;  %s705_s6 = scalar_lea.sflag [#allocation4], %s704_s7 }
 0x9ab   : > { %p965_p12 = pnand %p1541_p9, %p1540_p7 }
 0x9ad   : > { %1178 = dma.done.wait (!%p965_p12), %s705_s6, 16  }
 0x9ae   : > { %1180 = vsyncadd (!%p965_p12), %s705_s6, 4294967280  ;;  %p19_p2 = scmp.ge.s32.totalorder %s1348_s14, 4   ;;  %s1542_s18 = smov %s1187_s19 }
 0x9af   : > { %s1543_s19 = smov %s1191_s20  ;;  %s1544_s20 = smov %s1364_s27 }
 0x9b0   : > { %s1545_s21 = smov %s1348_s14  ;;  %21 = sbr.rel (!%p19_p2) target bundleno = 6 (0x6), region = 93 }
 0x9b7   :  { %709 = vsyncpa [#allocation3], 1 }
 0x9b8   :  { %711 = vsyncpa [#allocation3 + $0x1], 1 }
 0x9b9   :  { %712 = vsyncpa [#allocation6], 1 }
 0x9ba   :  { %713 = vsyncpa [#allocation4], 1 }
 0x9bb   :  { %715 = vsyncpa [#allocation4 + $0x1], 1 }

</bundles_post_ra>
